<compile_context>
chip_gen: v5e
topology: v5e:2x2
jax: 0.10.0
libtpu: 0.0.40
codegen_flags: <defaults>
</compile_context>

<pallas_src>
import jax
import jax.numpy as jnp
from jax import lax
from jax.experimental import pallas as pl
from jax.experimental.pallas import tpu as pltpu


# ----------------------------------------------------------------------------
# Pallas kernels (no epoch/weight constants baked in)
# ----------------------------------------------------------------------------
def _ce_ds_kernel(x_ref, lab_ref, d_ref,
                  out_ce_ref, out_dce_ref, out_d_ref,
                  acc_ce, acc_dce, acc_d):
    """Streams one (R,128) pixel tile; accumulates sum(ce), sum(d*ce), sum(d).

    x_ref   : (1, C, R, 128) logits tile (cast to f32 in-kernel)
    lab_ref : (1, R, 128)    integer labels tile (native dtype, cast here)
    d_ref   : (1, R, 128)    disMap[:, 0] tile    (native dtype, cast here)
    out_*   : (1, 1, 1)      per-batch-element partial sums (written at last t)
    acc_*   : (R, 128)       f32 vector accumulators (elementwise +=)
    """
    t = pl.program_id(1)

    @pl.when(t == 0)
    def _init():
        acc_ce[...] = jnp.zeros_like(acc_ce)
        acc_dce[...] = jnp.zeros_like(acc_dce)
        acc_d[...] = jnp.zeros_like(acc_d)

    x = x_ref[0].astype(jnp.float32)          # (C, R, 128)
    lab = lab_ref[0].astype(jnp.int32)        # (R, 128)
    d = d_ref[0].astype(jnp.float32)          # (R, 128)
    C = x.shape[0]

    # Channel reduction over the leading (non-minor) axis: vreg-wise VALU ops.
    xmax = x[0]
    for c in range(1, C):
        xmax = jnp.maximum(xmax, x[c])
    esum = jnp.zeros_like(xmax)
    tgt = jnp.zeros_like(xmax)
    for c in range(C):                        # unrolled; no (C,R,128) iota
        sh = x[c] - xmax
        esum = esum + jnp.exp(sh)
        tgt = tgt + jnp.where(lab == c, sh, 0.0)
    ce = jnp.log(esum) - tgt                  # (R, 128)

    acc_ce[...] += ce
    acc_dce[...] += d * ce
    acc_d[...] += d

    @pl.when(t == pl.num_programs(1) - 1)
    def _fin():
        out_ce_ref[0] = jnp.sum(acc_ce[...], keepdims=True)
        out_dce_ref[0] = jnp.sum(acc_dce[...], keepdims=True)
        out_d_ref[0] = jnp.sum(acc_d[...], keepdims=True)


def _ce_mean_kernel(x_ref, lab_ref, out_ce_ref, acc_ce):
    """Plain softmax cross-entropy partial sum (do_disMap_ds=False path)."""
    t = pl.program_id(1)

    @pl.when(t == 0)
    def _init():
        acc_ce[...] = jnp.zeros_like(acc_ce)

    x = x_ref[0].astype(jnp.float32)          # (C, R, 128)
    lab = lab_ref[0].astype(jnp.int32)        # (R, 128)
    C = x.shape[0]
    xmax = x[0]
    for c in range(1, C):
        xmax = jnp.maximum(xmax, x[c])
    esum = jnp.zeros_like(xmax)
    tgt = jnp.zeros_like(xmax)
    for c in range(C):
        sh = x[c] - xmax
        esum = esum + jnp.exp(sh)
        tgt = tgt + jnp.where(lab == c, sh, 0.0)
    ce = jnp.log(esum) - tgt
    acc_ce[...] += ce

    @pl.when(t == pl.num_programs(1) - 1)
    def _fin():
        out_ce_ref[0] = jnp.sum(acc_ce[...], keepdims=True)


# ----------------------------------------------------------------------------
# Tiling / dispatch helpers
# ----------------------------------------------------------------------------
_MIN_PALLAS_PIX = 256                       # below this, launch overhead dominates
_TARGET_STEP_BYTES = 2 * 1024 * 1024        # ~2 MiB streamed HBM per grid step
_VMEM_BUDGET_BYTES = 12 * 1024 * 1024       # fits v5e 16 MiB / v7x 32 MiB defaults


def _pick_rows(rows_total, c, x_bytes, lab_bytes, d_bytes):
    """Rows-of-128-pixels per grid step (multiple of 8, divides rows_total)."""
    per_row_stream = 128 * (c * x_bytes + lab_bytes + d_bytes)
    per_row_vmem = 128 * (2 * (c * x_bytes + lab_bytes + d_bytes)   # dbl-buffered inputs
                          + 3 * 4                                   # accumulators
                          + (c + 6) * 4)                            # f32 value scratch
    cap = min(_TARGET_STEP_BYTES // per_row_stream,
              _VMEM_BUDGET_BYTES // per_row_vmem)
    cap = max(8, (cap // 8) * 8)
    if rows_total <= cap:
        return rows_total                    # block dim == full dim is always legal
    for r in range(cap, 7, -8):              # largest multiple-of-8 divisor <= cap
        if rows_total % r == 0:
            return r
    return None


def _num_pixels(x):
    hw = 1
    for s in x.shape[2:]:
        hw *= s
    return hw


def _level_partials_pallas(x, y, dismap, rows):
    """Per-level streamed partial sums: (sum ce, sum d*ce, sum d, total_pixels)."""
    N, C = x.shape[0], x.shape[1]
    hw = _num_pixels(x)
    rows_total = hw // 128
    x4 = x.reshape(N, C, rows_total, 128)           # free trailing-dim reshape
    lab = y.reshape(N, rows_total, 128)             # native dtype; cast in-kernel
    grid = (N, rows_total // rows)
    cparams = pltpu.CompilerParams(
        dimension_semantics=("parallel", "arbitrary"))   # megacore-friendly (v7x)
    out_sds = jax.ShapeDtypeStruct((N, 1, 1), jnp.float32)
    out_spec = pl.BlockSpec((1, 1, 1), lambda n, t: (n, 0, 0))
    x_spec = pl.BlockSpec((1, C, rows, 128), lambda n, t: (n, 0, t, 0))
    px_spec = pl.BlockSpec((1, rows, 128), lambda n, t: (n, t, 0))

    if dismap is not None:
        d3 = dismap[:, 0].reshape(N, rows_total, 128)   # channel 0, native dtype
        out_ce, out_dce, out_d = pl.pallas_call(
            _ce_ds_kernel,
            out_shape=(out_sds, out_sds, out_sds),
            grid=grid,
            in_specs=[x_spec, px_spec, px_spec],
            out_specs=(out_spec, out_spec, out_spec),
            scratch_shapes=[pltpu.VMEM((rows, 128), jnp.float32)] * 3,
            compiler_params=cparams,
        )(x4, lab, d3)
        return jnp.sum(out_ce), jnp.sum(out_dce), jnp.sum(out_d), N * hw

    out_ce = pl.pallas_call(
        _ce_mean_kernel,
        out_shape=out_sds,
        grid=grid,
        in_specs=[x_spec, px_spec],
        out_specs=out_spec,
        scratch_shapes=[pltpu.VMEM((rows, 128), jnp.float32)],
        compiler_params=cparams,
    )(x4, lab)
    return jnp.sum(out_ce), None, None, N * hw


def _level_loss_jax(x, y, dismap, *, mode, w, warm):
    """Plain-JAX fallback for tiny / non-tileable deep-supervision levels."""
    C = x.shape[1]
    logits = jnp.moveaxis(x, 1, 0).reshape(C, -1).astype(jnp.float32)
    labels = y.reshape(-1).astype(jnp.int32)
    logp = jax.nn.log_softmax(logits, axis=0)
    ce = -jnp.take_along_axis(logp, labels[None, :], axis=0)[0]
    if dismap is None:
        return jnp.mean(ce)
    d = dismap[:, 0].reshape(-1).astype(jnp.float32)
    if mode != 0:
        temp = d / jnp.mean(d)
        if mode == 1:
            temp = warm + (1.0 - warm) * temp
        wd = w * temp + (1.0 - w)
        d = wd / jnp.mean(wd)
    return jnp.mean(d * ce)


def _ds_coeffs(mode, w, warm):
    """Closed form of the epoch-dependent disMap re-weighting.

    The re-weighted map has mean exactly 1, so
      mean(weighted*ce) = c_plain*mean(d*ce) + c_mean*mean(ce)
                          + c_ratio*sum(d*ce)/sum(d)
    """
    if mode == 0:
        return 1.0, 0.0, 0.0
    if mode == 2:
        warm = 0.0
    return 0.0, w * warm + 1.0 - w, w * (1.0 - warm)


def _level_loss(x, y, dismap, *, mode, w, warm):
    hw = _num_pixels(x)
    rows = None
    if hw % 128 == 0 and hw >= _MIN_PALLAS_PIX:
        d_bytes = 0 if dismap is None else jnp.dtype(dismap.dtype).itemsize
        rows = _pick_rows(hw // 128, x.shape[1],
                          jnp.dtype(x.dtype).itemsize,
                          jnp.dtype(y.dtype).itemsize, d_bytes)
    if rows is None:
        return _level_loss_jax(x, y, dismap, mode=mode, w=w, warm=warm)

    if dismap is None:
        s_ce, _, _, total = _level_partials_pallas(x, y, None, rows)
        return s_ce / total

    c_plain, c_mean, c_ratio = _ds_coeffs(mode, float(w), float(warm))
    s_ce, s_dce, s_d, total = _level_partials_pallas(x, y, dismap, rows)
    loss = jnp.float32(0.0)
    if c_plain != 0.0:
        loss = loss + c_plain * s_dce / total
    if c_mean != 0.0:
        loss = loss + c_mean * s_ce / total
    if c_ratio != 0.0:
        loss = loss + c_ratio * s_dce / s_d
    return loss


# ----------------------------------------------------------------------------
# MultipleOutputLoss2.forward equivalent
# ----------------------------------------------------------------------------
def multiple_output_loss2(xs, ys, dismaps=None, epoch=None, weight_factors=None,
                          do_disMap_ds=True):
    assert isinstance(xs, (tuple, list)), 'x must be either tuple or list'
    assert isinstance(ys, (tuple, list)), 'y must be either tuple or list'
    weights = [1.0] * len(xs) if weight_factors is None else list(weight_factors)

    if do_disMap_ds:
        assert isinstance(dismaps, (tuple, list)), 'disMap must be either tuple or list'
        Tauo_ds, ds_epoch = 0, 1000
        total = weights[0] * _level_loss(xs[0], ys[0], dismaps[0],
                                         mode=0, w=weights[0], warm=0.0)
        for i in range(1, len(xs)):
            if weights[i] != 0:
                if epoch <= Tauo_ds:
                    mode, warm = 0, 0.0
                elif Tauo_ds < epoch <= Tauo_ds + ds_epoch:
                    mode = 1
                    warm = float(Tauo_ds + ds_epoch - epoch) / ds_epoch
                else:
                    mode, warm = 2, 0.0
                total = total + weights[i] * _level_loss(
                    xs[i], ys[i], dismaps[i], mode=mode, w=weights[i], warm=warm)
        return total
    else:
        total = weights[0] * _level_loss(xs[0], ys[0], None,
                                         mode=0, w=weights[0], warm=0.0)
        for i in range(1, len(xs)):
            if weights[i] != 0:
                total = total + weights[i] * _level_loss(
                    xs[i], ys[i], None, mode=0, w=weights[i], warm=0.0)
        return total


# ------------------------- pure-JAX reference (for checking) -----------------
def _ref_level(x, y, dismap, mode, w, warm):
    C = x.shape[1]
    logits = jnp.moveaxis(x, 1, 0).reshape(C, -1)
    labels = y.reshape(-1)
    logp = jax.nn.log_softmax(logits, axis=0)
    ce = -logp[labels, jnp.arange(logits.shape[1])]
    if dismap is None:
        return jnp.mean(ce)
    d = dismap[:, 0].reshape(-1).astype(jnp.float32)
    if mode != 0:
        temp = d / jnp.mean(d)
        if mode == 1:
            temp = warm + (1.0 - warm) * temp
        wd = w * temp + (1.0 - w)
        d = wd / jnp.mean(wd)
    return jnp.mean(d * ce)


def _ref_total(xs, ys, dms, epoch, weights, do_disMap_ds=True):
    if do_disMap_ds:
        Tauo_ds, ds_epoch = 0, 1000
        total = weights[0] * _ref_level(xs[0], ys[0], dms[0], 0, weights[0], 0.0)
        for i in range(1, len(xs)):
            if weights[i] != 0:
                if epoch <= Tauo_ds:
                    mode, warm = 0, 0.0
                elif epoch <= Tauo_ds + ds_epoch:
                    mode, warm = 1, float(Tauo_ds + ds_epoch - epoch) / ds_epoch
                else:
                    mode, warm = 2, 0.0
                total = total + weights[i] * _ref_level(xs[i], ys[i], dms[i],
                                                        mode, weights[i], warm)
        return total
    else:
        total = weights[0] * _ref_level(xs[0], ys[0], None, 0, weights[0], 0.0)
        for i in range(1, len(xs)):
            if weights[i] != 0:
                total = total + weights[i] * _ref_level(xs[i], ys[i], None, 0,
                                                        weights[i], 0.0)
        return total


if __name__ == "__main__":
    key = jax.random.PRNGKey(0)
    N, C = 2, 4
    spatials = [32, 16, 8, 4]                       # deep-supervision resolutions
    raw = [1.0, 0.5, 0.25, 0.0]                     # nnU-Net-style ds weights
    s = sum(raw)
    weight_factors = [r / s for r in raw]

    xs, ys, dms = [], [], []
    for sp in spatials:
        key, k1, k2, k3 = jax.random.split(key, 4)
        xs.append(jax.random.normal(k1, (N, C, sp, sp), dtype=jnp.float32))
        ys.append(jax.random.randint(k2, (N, 1, sp, sp), 0, C, dtype=jnp.int32))
        dms.append(jax.random.uniform(k3, (N, 1, sp, sp), dtype=jnp.float32,
                                      minval=0.5, maxval=2.0))

    # warm-start branch (mode 1)
    loss_ws = jax.block_until_ready(multiple_output_loss2(
        xs, ys, dms, epoch=500, weight_factors=weight_factors, do_disMap_ds=True))
    ref_ws = jax.block_until_ready(_ref_total(xs, ys, dms, 500, weight_factors))
    assert jnp.allclose(loss_ws, ref_ws, rtol=1e-4, atol=1e-5), (loss_ws, ref_ws)

    # full re-weighting branch (mode 2)
    loss_rw = jax.block_until_ready(multiple_output_loss2(
        xs, ys, dms, epoch=2000, weight_factors=weight_factors, do_disMap_ds=True))
    ref_rw = jax.block_until_ready(_ref_total(xs, ys, dms, 2000, weight_factors))
    assert jnp.allclose(loss_rw, ref_rw, rtol=1e-4, atol=1e-5), (loss_rw, ref_rw)

    # epoch <= Tauo_ds (mode 0, plain disMap weighting)
    loss_m0 = jax.block_until_ready(multiple_output_loss2(
        xs, ys, dms, epoch=0, weight_factors=weight_factors, do_disMap_ds=True))
    ref_m0 = jax.block_until_ready(_ref_total(xs, ys, dms, 0, weight_factors))
    assert jnp.allclose(loss_m0, ref_m0, rtol=1e-4, atol=1e-5), (loss_m0, ref_m0)

    # no deep-supervision disMap weighting (base loss without disMap stream)
    loss_nd = jax.block_until_ready(multiple_output_loss2(
        xs, ys, None, epoch=500, weight_factors=weight_factors, do_disMap_ds=False))
    ref_nd = jax.block_until_ready(_ref_total(xs, ys, None, 500, weight_factors,
                                              do_disMap_ds=False))
    assert jnp.allclose(loss_nd, ref_nd, rtol=1e-4, atol=1e-5), (loss_nd, ref_nd)

    print("KERNEL_OK")
</pallas_src>

<mosaic_0001>
module attributes {stable_mosaic.version = 11 : i64} {
  func.func @_ce_ds_kernel(%arg0: i32, %arg1: i32, %arg2: memref<1x4x8x128xf32, #tpu.memory_space<vmem>>, %arg3: memref<1x8x128xi32, #tpu.memory_space<vmem>>, %arg4: memref<1x8x128xf32, #tpu.memory_space<vmem>>, %arg5: memref<1x1x1xf32, #tpu.memory_space<vmem>>, %arg6: memref<1x1x1xf32, #tpu.memory_space<vmem>>, %arg7: memref<1x1x1xf32, #tpu.memory_space<vmem>>, %arg8: memref<8x128xf32, #tpu.memory_space<vmem>>, %arg9: memref<8x128xf32, #tpu.memory_space<vmem>>, %arg10: memref<8x128xf32, #tpu.memory_space<vmem>>) attributes {dimension_semantics = [#tpu.dimension_semantics<parallel>, #tpu.dimension_semantics<arbitrary>], iteration_bounds = array<i64: 2, 1>, scalar_prefetch = 0 : i64, scratch_operands = 3 : i64, tpu.core_type = #tpu.core_type<tc>, window_params = [{transform_indices = @transform_0, window_bounds = array<i64: 1, 4, 8, 128>}, {transform_indices = @transform_1, window_bounds = array<i64: 1, 8, 128>}, {transform_indices = @transform_2, window_bounds = array<i64: 1, 8, 128>}, {transform_indices = @transform_3, window_bounds = array<i64: 1, 1, 1>}, {transform_indices = @transform_4, window_bounds = array<i64: 1, 1, 1>}, {transform_indices = @transform_5, window_bounds = array<i64: 1, 1, 1>}]} {
    %c0_i32 = arith.constant 0 : i32
    %0 = arith.cmpi eq, %arg1, %c0_i32 : i32
    %1 = arith.extui %0 : i1 to i32
    %c0_i32_0 = arith.constant 0 : i32
    %2 = arith.cmpi ne, %1, %c0_i32_0 : i32
    scf.if %2 {
      %cst_30 = arith.constant 0.000000e+00 : f32
      %77 = vector.broadcast %cst_30 : f32 to vector<8x128xf32>
      %c0_31 = arith.constant 0 : index
      %c0_32 = arith.constant 0 : index
      %78 = vector.load %arg8[%c0_31, %c0_32] : memref<8x128xf32, #tpu.memory_space<vmem>>, vector<8x128xf32>
      tpu.vector_store %arg8[%c0_31, %c0_32], %77 {strides = array<i32>} : memref<8x128xf32, #tpu.memory_space<vmem>>, vector<8x128xf32>,
      %cst_33 = arith.constant 0.000000e+00 : f32
      %79 = vector.broadcast %cst_33 : f32 to vector<8x128xf32>
      %c0_34 = arith.constant 0 : index
      %c0_35 = arith.constant 0 : index
      %80 = vector.load %arg9[%c0_34, %c0_35] : memref<8x128xf32, #tpu.memory_space<vmem>>, vector<8x128xf32>
      tpu.vector_store %arg9[%c0_34, %c0_35], %79 {strides = array<i32>} : memref<8x128xf32, #tpu.memory_space<vmem>>, vector<8x128xf32>,
      %cst_36 = arith.constant 0.000000e+00 : f32
      %81 = vector.broadcast %cst_36 : f32 to vector<8x128xf32>
      %c0_37 = arith.constant 0 : index
      %c0_38 = arith.constant 0 : index
      %82 = vector.load %arg10[%c0_37, %c0_38] : memref<8x128xf32, #tpu.memory_space<vmem>>, vector<8x128xf32>
      tpu.vector_store %arg10[%c0_37, %c0_38], %81 {strides = array<i32>} : memref<8x128xf32, #tpu.memory_space<vmem>>, vector<8x128xf32>,
    } else {
    }
    %c0 = arith.constant 0 : index
    %c0_1 = arith.constant 0 : index
    %c0_2 = arith.constant 0 : index
    %c0_3 = arith.constant 0 : index
    %3 = vector.load %arg2[%c0, %c0_1, %c0_2, %c0_3] : memref<1x4x8x128xf32, #tpu.memory_space<vmem>>, vector<1x4x8x128xf32>
    %4 = vector.shape_cast %3 : vector<1x4x8x128xf32> to vector<4x8x128xf32>
    %c0_4 = arith.constant 0 : index
    %c0_5 = arith.constant 0 : index
    %c0_6 = arith.constant 0 : index
    %5 = vector.load %arg3[%c0_4, %c0_5, %c0_6] : memref<1x8x128xi32, #tpu.memory_space<vmem>>, vector<1x8x128xi32>
    %6 = vector.shape_cast %5 : vector<1x8x128xi32> to vector<8x128xi32>
    %c0_7 = arith.constant 0 : index
    %c0_8 = arith.constant 0 : index
    %c0_9 = arith.constant 0 : index
    %7 = vector.load %arg4[%c0_7, %c0_8, %c0_9] : memref<1x8x128xf32, #tpu.memory_space<vmem>>, vector<1x8x128xf32>
    %8 = vector.shape_cast %7 : vector<1x8x128xf32> to vector<8x128xf32>
    %9 = vector.extract_strided_slice %4 {offsets = [0, 0, 0], sizes = [1, 8, 128], strides = [1, 1, 1]} : vector<4x8x128xf32> to vector<1x8x128xf32>
    %10 = vector.shape_cast %9 : vector<1x8x128xf32> to vector<8x128xf32>
    %11 = vector.extract_strided_slice %4 {offsets = [1, 0, 0], sizes = [1, 8, 128], strides = [1, 1, 1]} : vector<4x8x128xf32> to vector<1x8x128xf32>
    %12 = vector.shape_cast %11 : vector<1x8x128xf32> to vector<8x128xf32>
    %13 = arith.maximumf %10, %12 : vector<8x128xf32>
    %14 = vector.extract_strided_slice %4 {offsets = [2, 0, 0], sizes = [1, 8, 128], strides = [1, 1, 1]} : vector<4x8x128xf32> to vector<1x8x128xf32>
    %15 = vector.shape_cast %14 : vector<1x8x128xf32> to vector<8x128xf32>
    %16 = arith.maximumf %13, %15 : vector<8x128xf32>
    %17 = vector.extract_strided_slice %4 {offsets = [3, 0, 0], sizes = [1, 8, 128], strides = [1, 1, 1]} : vector<4x8x128xf32> to vector<1x8x128xf32>
    %18 = vector.shape_cast %17 : vector<1x8x128xf32> to vector<8x128xf32>
    %19 = arith.maximumf %16, %18 : vector<8x128xf32>
    %cst = arith.constant 0.000000e+00 : f32
    %20 = vector.broadcast %cst : f32 to vector<8x128xf32>
    %cst_10 = arith.constant 0.000000e+00 : f32
    %21 = vector.broadcast %cst_10 : f32 to vector<8x128xf32>
    %22 = vector.extract_strided_slice %4 {offsets = [0, 0, 0], sizes = [1, 8, 128], strides = [1, 1, 1]} : vector<4x8x128xf32> to vector<1x8x128xf32>
    %23 = vector.shape_cast %22 : vector<1x8x128xf32> to vector<8x128xf32>
    %24 = arith.subf %23, %19 : vector<8x128xf32>
    %25 = math.exp %24 : vector<8x128xf32>
    %26 = arith.addf %20, %25 : vector<8x128xf32>
    %c0_i32_11 = arith.constant 0 : i32
    %27 = vector.broadcast %c0_i32_11 : i32 to vector<8x128xi32>
    %28 = arith.cmpi eq, %6, %27 : vector<8x128xi32>
    %cst_12 = arith.constant 0.000000e+00 : f32
    %29 = vector.broadcast %cst_12 : f32 to vector<8x128xf32>
    %30 = arith.select %28, %24, %29 : vector<8x128xi1>, vector<8x128xf32>
    %31 = arith.addf %21, %30 : vector<8x128xf32>
    %32 = vector.extract_strided_slice %4 {offsets = [1, 0, 0], sizes = [1, 8, 128], strides = [1, 1, 1]} : vector<4x8x128xf32> to vector<1x8x128xf32>
    %33 = vector.shape_cast %32 : vector<1x8x128xf32> to vector<8x128xf32>
    %34 = arith.subf %33, %19 : vector<8x128xf32>
    %35 = math.exp %34 : vector<8x128xf32>
    %36 = arith.addf %26, %35 : vector<8x128xf32>
    %c1_i32 = arith.constant 1 : i32
    %37 = vector.broadcast %c1_i32 : i32 to vector<8x128xi32>
    %38 = arith.cmpi eq, %6, %37 : vector<8x128xi32>
    %cst_13 = arith.constant 0.000000e+00 : f32
    %39 = vector.broadcast %cst_13 : f32 to vector<8x128xf32>
    %40 = arith.select %38, %34, %39 : vector<8x128xi1>, vector<8x128xf32>
    %41 = arith.addf %31, %40 : vector<8x128xf32>
    %42 = vector.extract_strided_slice %4 {offsets = [2, 0, 0], sizes = [1, 8, 128], strides = [1, 1, 1]} : vector<4x8x128xf32> to vector<1x8x128xf32>
    %43 = vector.shape_cast %42 : vector<1x8x128xf32> to vector<8x128xf32>
    %44 = arith.subf %43, %19 : vector<8x128xf32>
    %45 = math.exp %44 : vector<8x128xf32>
    %46 = arith.addf %36, %45 : vector<8x128xf32>
    %c2_i32 = arith.constant 2 : i32
    %47 = vector.broadcast %c2_i32 : i32 to vector<8x128xi32>
    %48 = arith.cmpi eq, %6, %47 : vector<8x128xi32>
    %cst_14 = arith.constant 0.000000e+00 : f32
    %49 = vector.broadcast %cst_14 : f32 to vector<8x128xf32>
    %50 = arith.select %48, %44, %49 : vector<8x128xi1>, vector<8x128xf32>
    %51 = arith.addf %41, %50 : vector<8x128xf32>
    %52 = vector.extract_strided_slice %4 {offsets = [3, 0, 0], sizes = [1, 8, 128], strides = [1, 1, 1]} : vector<4x8x128xf32> to vector<1x8x128xf32>
    %53 = vector.shape_cast %52 : vector<1x8x128xf32> to vector<8x128xf32>
    %54 = arith.subf %53, %19 : vector<8x128xf32>
    %55 = math.exp %54 : vector<8x128xf32>
    %56 = arith.addf %46, %55 : vector<8x128xf32>
    %c3_i32 = arith.constant 3 : i32
    %57 = vector.broadcast %c3_i32 : i32 to vector<8x128xi32>
    %58 = arith.cmpi eq, %6, %57 : vector<8x128xi32>
    %cst_15 = arith.constant 0.000000e+00 : f32
    %59 = vector.broadcast %cst_15 : f32 to vector<8x128xf32>
    %60 = arith.select %58, %54, %59 : vector<8x128xi1>, vector<8x128xf32>
    %61 = arith.addf %51, %60 : vector<8x128xf32>
    %62 = math.log %56 : vector<8x128xf32>
    %63 = arith.subf %62, %61 : vector<8x128xf32>
    %c0_16 = arith.constant 0 : index
    %c0_17 = arith.constant 0 : index
    %64 = vector.load %arg8[%c0_16, %c0_17] : memref<8x128xf32, #tpu.memory_space<vmem>>, vector<8x128xf32>
    %65 = arith.addf %64, %63 : vector<8x128xf32>
    %c0_18 = arith.constant 0 : index
    %c0_19 = arith.constant 0 : index
    %66 = vector.load %arg8[%c0_18, %c0_19] : memref<8x128xf32, #tpu.memory_space<vmem>>, vector<8x128xf32>
    tpu.vector_store %arg8[%c0_18, %c0_19], %65 {strides = array<i32>} : memref<8x128xf32, #tpu.memory_space<vmem>>, vector<8x128xf32>,
    %c0_20 = arith.constant 0 : index
    %c0_21 = arith.constant 0 : index
    %67 = vector.load %arg9[%c0_20, %c0_21] : memref<8x128xf32, #tpu.memory_space<vmem>>, vector<8x128xf32>
    %68 = arith.mulf %8, %63 : vector<8x128xf32>
    %69 = arith.addf %67, %68 : vector<8x128xf32>
    %c0_22 = arith.constant 0 : index
    %c0_23 = arith.constant 0 : index
    %70 = vector.load %arg9[%c0_22, %c0_23] : memref<8x128xf32, #tpu.memory_space<vmem>>, vector<8x128xf32>
    tpu.vector_store %arg9[%c0_22, %c0_23], %69 {strides = array<i32>} : memref<8x128xf32, #tpu.memory_space<vmem>>, vector<8x128xf32>,
    %c0_24 = arith.constant 0 : index
    %c0_25 = arith.constant 0 : index
    %71 = vector.load %arg10[%c0_24, %c0_25] : memref<8x128xf32, #tpu.memory_space<vmem>>, vector<8x128xf32>
    %72 = arith.addf %71, %8 : vector<8x128xf32>
    %c0_26 = arith.constant 0 : index
    %c0_27 = arith.constant 0 : index
    %73 = vector.load %arg10[%c0_26, %c0_27] : memref<8x128xf32, #tpu.memory_space<vmem>>, vector<8x128xf32>
    tpu.vector_store %arg10[%c0_26, %c0_27], %72 {strides = array<i32>} : memref<8x128xf32, #tpu.memory_space<vmem>>, vector<8x128xf32>,
    %c0_i32_28 = arith.constant 0 : i32
    %74 = arith.cmpi eq, %arg1, %c0_i32_28 : i32
    %75 = arith.extui %74 : i1 to i32
    %c0_i32_29 = arith.constant 0 : i32
    %76 = arith.cmpi ne, %75, %c0_i32_29 : i32
    scf.if %76 {
      %c0_30 = arith.constant 0 : index
      %c0_31 = arith.constant 0 : index
      %77 = vector.load %arg8[%c0_30, %c0_31] : memref<8x128xf32, #tpu.memory_space<vmem>>, vector<8x128xf32>
      %78 = vector.shape_cast %77 : vector<8x128xf32> to vector<1x8x128xf32>
      %cst_32 = arith.constant dense<0.000000e+00> : vector<1xf32>
      %79 = vector.multi_reduction <add>, %78, %cst_32 [1, 2] : vector<1x8x128xf32> to vector<1xf32>
      %80 = vector.shape_cast %79 : vector<1xf32> to vector<1x1x1xf32>
      %81 = vector.extract %80[0, 0, 0] : f32 from vector<1x1x1xf32>
      %82 = vector.broadcast %81 : f32 to vector<1x1xf32>
      %c0_33 = arith.constant 0 : index
      %c0_34 = arith.constant 0 : index
      %c0_35 = arith.constant 0 : index
      %83 = vector.load %arg5[%c0_33, %c0_34, %c0_35] : memref<1x1x1xf32, #tpu.memory_space<vmem>>, vector<1x1x1xf32>
      %84 = vector.shape_cast %83 : vector<1x1x1xf32> to vector<1x1xf32>
      %85 = vector.shape_cast %82 : vector<1x1xf32> to vector<1x1x1xf32>
      tpu.vector_store %arg5[%c0_33, %c0_34, %c0_35], %85 {strides = array<i32>} : memref<1x1x1xf32, #tpu.memory_space<vmem>>, vector<1x1x1xf32>,
      %c0_36 = arith.constant 0 : index
      %c0_37 = arith.constant 0 : index
      %86 = vector.load %arg9[%c0_36, %c0_37] : memref<8x128xf32, #tpu.memory_space<vmem>>, vector<8x128xf32>
      %87 = vector.shape_cast %86 : vector<8x128xf32> to vector<1x8x128xf32>
      %cst_38 = arith.constant dense<0.000000e+00> : vector<1xf32>
      %88 = vector.multi_reduction <add>, %87, %cst_38 [1, 2] : vector<1x8x128xf32> to vector<1xf32>
      %89 = vector.shape_cast %88 : vector<1xf32> to vector<1x1x1xf32>
      %90 = vector.extract %89[0, 0, 0] : f32 from vector<1x1x1xf32>
      %91 = vector.broadcast %90 : f32 to vector<1x1xf32>
      %c0_39 = arith.constant 0 : index
      %c0_40 = arith.constant 0 : index
      %c0_41 = arith.constant 0 : index
      %92 = vector.load %arg6[%c0_39, %c0_40, %c0_41] : memref<1x1x1xf32, #tpu.memory_space<vmem>>, vector<1x1x1xf32>
      %93 = vector.shape_cast %92 : vector<1x1x1xf32> to vector<1x1xf32>
      %94 = vector.shape_cast %91 : vector<1x1xf32> to vector<1x1x1xf32>
      tpu.vector_store %arg6[%c0_39, %c0_40, %c0_41], %94 {strides = array<i32>} : memref<1x1x1xf32, #tpu.memory_space<vmem>>, vector<1x1x1xf32>,
      %c0_42 = arith.constant 0 : index
      %c0_43 = arith.constant 0 : index
      %95 = vector.load %arg10[%c0_42, %c0_43] : memref<8x128xf32, #tpu.memory_space<vmem>>, vector<8x128xf32>
      %96 = vector.shape_cast %95 : vector<8x128xf32> to vector<1x8x128xf32>
      %cst_44 = arith.constant dense<0.000000e+00> : vector<1xf32>
      %97 = vector.multi_reduction <add>, %96, %cst_44 [1, 2] : vector<1x8x128xf32> to vector<1xf32>
      %98 = vector.shape_cast %97 : vector<1xf32> to vector<1x1x1xf32>
      %99 = vector.extract %98[0, 0, 0] : f32 from vector<1x1x1xf32>
      %100 = vector.broadcast %99 : f32 to vector<1x1xf32>
      %c0_45 = arith.constant 0 : index
      %c0_46 = arith.constant 0 : index
      %c0_47 = arith.constant 0 : index
      %101 = vector.load %arg7[%c0_45, %c0_46, %c0_47] : memref<1x1x1xf32, #tpu.memory_space<vmem>>, vector<1x1x1xf32>
      %102 = vector.shape_cast %101 : vector<1x1x1xf32> to vector<1x1xf32>
      %103 = vector.shape_cast %100 : vector<1x1xf32> to vector<1x1x1xf32>
      tpu.vector_store %arg7[%c0_45, %c0_46, %c0_47], %103 {strides = array<i32>} : memref<1x1x1xf32, #tpu.memory_space<vmem>>, vector<1x1x1xf32>,
    } else {
    }
    return
  }
  func.func @transform_0(%arg0: i32, %arg1: i32) -> (i32, i32, i32, i32) {
    %c0_i32 = arith.constant 0 : i32
    %c0_i32_0 = arith.constant 0 : i32
    %c0_i32_1 = arith.constant 0 : i32
    return %arg0, %c0_i32, %arg1, %c0_i32_0 : i32, i32, i32, i32
  }
  func.func @transform_1(%arg0: i32, %arg1: i32) -> (i32, i32, i32) {
    %c0_i32 = arith.constant 0 : i32
    %c0_i32_0 = arith.constant 0 : i32
    return %arg0, %arg1, %c0_i32 : i32, i32, i32
  }
  func.func @transform_2(%arg0: i32, %arg1: i32) -> (i32, i32, i32) {
    %c0_i32 = arith.constant 0 : i32
    %c0_i32_0 = arith.constant 0 : i32
    return %arg0, %arg1, %c0_i32 : i32, i32, i32
  }
  func.func @transform_3(%arg0: i32, %arg1: i32) -> (i32, i32, i32) {
    %c0_i32 = arith.constant 0 : i32
    %c0_i32_0 = arith.constant 0 : i32
    %c0_i32_1 = arith.constant 0 : i32
    return %arg0, %c0_i32, %c0_i32_0 : i32, i32, i32
  }
  func.func @transform_4(%arg0: i32, %arg1: i32) -> (i32, i32, i32) {
    %c0_i32 = arith.constant 0 : i32
    %c0_i32_0 = arith.constant 0 : i32
    %c0_i32_1 = arith.constant 0 : i32
    return %arg0, %c0_i32, %c0_i32_0 : i32, i32, i32
  }
  func.func @transform_5(%arg0: i32, %arg1: i32) -> (i32, i32, i32) {
    %c0_i32 = arith.constant 0 : i32
    %c0_i32_0 = arith.constant 0 : i32
    %c0_i32_1 = arith.constant 0 : i32
    return %arg0, %c0_i32, %c0_i32_0 : i32, i32, i32
  }
}

</mosaic_0001>

<bundles_post_ra>
// kernel: tpu_custom_call.1
= control target key start
LH: loop header
LB: loop body
LE: loop exit
PB: predicated region body
PF: predicated region fallthrough
CT: control target
= control target key end

     0   :  { %s1025_s0 = inlined_call_operand.hbm [shape: f32[2,4,8,128], index: 0, kind: input, shape index: {}]   ;;  %s1026_s1 = inlined_call_operand.hbm [shape: s32[2,8,128], index: 1, kind: input, shape index: {}]   ;;  %s1027_s2 = inlined_call_operand.hbm [shape: f32[2,8,128], index: 2, kind: input, shape index: {}]   ;;  %s1028_s3 = inlined_call_operand.vmem [shape: f32[2,1,1], index: 3, kind: output, shape index: {0}]   ;;  %s1029_s4 = inlined_call_operand.vmem [shape: f32[2,1,1], index: 4, kind: output, shape index: {1}]   ;;  %s1030_s5 = inlined_call_operand.vmem [shape: f32[2,1,1], index: 5, kind: output, shape index: {2}]  }
   0x1   :  { %1034 = sst [smem:[#allocation13_spill]] %s1026_s1 }
   0x2   :  { %1035 = sst [smem:[#allocation14_spill]] %s1027_s2 }
   0x3   :  { %11 = vsyncpa [#allocation6], 0 }
   0x4   :  { %13 = vsyncpa [#allocation6 + $0x1], 0 }
   0x5   :  { %14 = vsyncpa [#allocation8], 0 }
   0x6   :  { %16 = vsyncpa [#allocation8 + $0x1], 0  ;;  %s896_s18 = smov 0   ;;  %s898_s19 = smov 0  }
   0x7   :  { %s900_s20 = smov 0   ;;  %s902_s21 = smov 0  }
   0x8   :  { %s904_s22 = smov 0   ;;  %s906_s23 = smov 0  }
   0x9 LB: > { %s1031_s24 = sadd.s32 4294967295, %s862_s23   ;;  %s34_s25 = sadd.s32 1, %s858_s22  ;;  %s862_s23 = sphi %s906_s23, %s22_s23   ;;  %s858_s22 = sphi %s904_s22, %s1049_s22   ;;  %s854_s21 = sphi %s902_s21, %s1048_s21   ;;  %s850_s20 = sphi %s900_s20, %s1047_s20   ;;  %s846_s19 = sphi %s898_s19, %s1046_s19   ;;  %s842_s18 = sphi %s896_s18, %s1045_s18  }
   0xa   : > { %p36_p0 = scmp.ge.s32.totalorder %s34_s25, 2  ;;  %s43_s26 = sadd.s32 1, %s850_s20 }
   0xb   : > { %p50_p1 = scmp.ne.s32.totalorder %s850_s20, %s846_s19  ;;  %p51_p2 = scmp.eq.s32.totalorder %s862_s23, 0 }
   0xc   : > { %s1051_s25 = smov (%p36_p0, %s34_s25), 0  ;;  %p56_p4 = scmp.ne.s32.totalorder %s846_s19, %s842_s18 }
   0xd   : > { %1036 = sst [smem:[#allocation12_spill]] %s1051_s25  ;;  %p52_p3 = por %p51_p2, %p50_p1 }
   0xe   : > { %s38_s27 = ssub.s32 %s858_s22, %s1051_s25  ;;  %p57_p5 = scmp.eq.s32.totalorder %s1031_s24, 0 }
   0xf   : > { %p41_p6 = scmp.eq.s32.totalorder %s38_s27, 0  ;;  %p657_p8 = scmp.lt.s32.totalorder %s862_s23, 2 }
  0x10   : > { %p937_p7 = por %p57_p5, %p56_p4  ;;  %s946_s30 = sand.u32 1, %s850_s20  }
  0x11   : > { %s943_s29 = scalar_select %p41_p6, %s850_s20, %s43_s26  }
  0x12   : > { %p948_p9 = pnand %p657_p8, %p52_p3  ;;  %s237_s7 = sand.u32 1, %s862_s23  }
  0x13   : > { %s1032_s8 = sshll.u32 %s946_s30, 3  ;;  %s625_s9 = sshll.u32 %s858_s22, 3 }
  0x14   : > { %s1039_s1 = sld [smem:[#allocation13_spill]]  ;;  %s241_s13 = scalar_lea.vmem [#allocation7], %s1032_s8 }
  0x15   : > { %s250_s14 = sshll.u32 %s241_s13, 4  ;;  %s238_s16 = scalar_lea.sflag [#allocation8], %s237_s7  ;;  %s251_s14 = int_to_ptr.vmem [resolvable:$true] %s250_s14 }
  0x16   : > { %s1040_s2 = sld [smem:[#allocation14_spill]]  ;;  %p628_p10 = scmp.ge.s32.totalorder %s862_s23, 1 }
  0x17   : > { %p275_p11 = scmp.lt.s32.totalorder %s862_s23, 3  ;;  %s621_s10 = sshll.u32 %s946_s30, 5 }
  0x18   : > { %s634_s11 = sshll.u32 %s858_s22, 5  ;;  %s215_s17 = scalar_lea.sflag [#allocation6], %s946_s30 }
  0x19   : > { %p967_p12 = pnand %p628_p10, %p275_p11  ;;  %s224_s7 = scalar_lea.hbm %s1025_s0, %s634_s11 }
  0x1a   : > { %s246_s12 = scalar_lea.hbm %s1039_s1, %s625_s9  ;;  %s225_s24 = sshll.u32 %s224_s7, 4  ;;  %s226_s24 = int_to_ptr.hbm [resolvable:$true] %s225_s24 }
  0x1b   : > { %s248_s15 = sshll.u32 %s246_s12, 4  ;;  %s864_s18 = smov 128   ;;  %s249_s15 = int_to_ptr.hbm [resolvable:$true] %s248_s15 }
  0x1c   : > { %653 = dma.hbm_to_vmem [thread:$0]  (!%p948_p9), %s249_s15, 128, %s251_s14, %s238_s16  }
  0x1d   : > { %s266_s26 = scalar_lea.hbm %s1040_s2, %s625_s9  ;;  %s218_s14 = scalar_lea.vmem [#allocation5], %s621_s10 }
  0x1e   : > { %s227_s15 = sshll.u32 %s218_s14, 4  ;;  %s268_s9 = sshll.u32 %s266_s26, 4  ;;  %s228_s15 = int_to_ptr.vmem [resolvable:$true] %s227_s15  ;;  %s269_s9 = int_to_ptr.hbm [resolvable:$true] %s268_s9 }
  0x1f   : > { %s865_s8 = smov 8   ;;  %s1042_s1 = sshll.u32 %s946_s30, 3 }
  0x20   : > { %650 = dma.hbm_to_vmem [thread:$0]  (!%p948_p9), %s226_s24, 512, %s228_s15, %s215_s17, %s864_s18, %s864_s18, %s865_s8  }
  0x21   : > { %s261_s2 = scalar_lea.vmem [#allocation9], %s1042_s1  ;;  %279 = sbr.rel (%p967_p12) target bundleno = 268 (0x10c), region = 32 }
  0x22   : > { %s270_s25 = sshll.u32 %s261_s2, 4  ;;  %s281_s10 = sand.u32 (!%p967_p12), 1, %s846_s19   ;;  %s271_s25 = int_to_ptr.vmem [resolvable:$true] %s270_s25 }
  0x23   : > { %656 = dma.hbm_to_vmem [thread:$0]  (!%p948_p9), %s269_s9, 128, %s271_s25, %s238_s16  }
  0x24   : > { %s629_s11 = sshll.u32 (!%p967_p12), %s281_s10, 5  ;;  %s282_s26 = scalar_lea.sflag (!%p967_p12), [#allocation6], %s281_s10 }
  0x25   : > { %s285_s12 = scalar_lea.vmem (!%p967_p12), [#allocation5], %s629_s11 }
  0x26   : > { %833 = dma.done.wait (%p937_p7), %s282_s26, 512  }
  0x27   : > { %835 = vsyncadd (%p937_p7), %s282_s26, 4294966784  ;;  %s1043_s1 = sadd.s32 4294967295, %s862_s23   ;;  %s630_s24 = sshll.u32 %s281_s10, 3 }
  0x28   : > { %s291_s2 = sand.u32 1, %s1043_s1   ;;  %s295_s30 = scalar_lea.vmem [#allocation7], %s630_s24 }
  0x29   : > { %s292_s25 = scalar_lea.sflag [#allocation8], %s291_s2 }
  0x2a   : > { %837 = dma.done.wait (%p937_p7), %s292_s25, 256  }
  0x2b   : > { %839 = vsyncadd (%p937_p7), %s292_s25, 4294967040  ;;  %v363_v0 = vld [vmem:[%s285_s12] sm:$0xff]  ;;  %v364_v1 = vld [vmem:[%s285_s12 + $0x8] sm:$0xff]  ;;  %s305_s6 = scalar_lea.vmem [#allocation9], %s630_s24  ;;  %p347_p13 = scmp.lt.s32.totalorder %s854_s21, 1  ;;  %vm427_vm4 = vcmask 0  }
  0x2c   : > { %v365_v2 = vld [vmem:[%s285_s12 + $0x10] sm:$0xff]  ;;  %v369_v3 = vmax.f32 %v363_v0, %v364_v1  ;;  %v366_v4 = vld [vmem:[%s285_s12 + $0x18] sm:$0xff]  ;;  %v367_v16 = vld [vmem:[%s295_s30] sm:$0xff] }
  0x2d   : > { %v368_v6 = vld [vmem:[%s305_s6] sm:$0xff]  ;;  %vm376_vm0 = vcmp.eq.s32.totalorder %v367_v16, 0  ;;  %vm383_vm1 = vcmp.eq.s32.totalorder %v367_v16, 1  ;;  %vm390_vm2 = vcmp.eq.s32.totalorder %v367_v16, 2  ;;  %vm397_vm3 = vcmp.eq.s32.totalorder %v367_v16, 3  ;;  %s1053_s21 = smov (!%p347_p13, %s854_s21), 1 }
  0x2e   : > { %v370_v5 = vmax.f32 %v369_v3, %v365_v2  ;;  %442 = vadd.xlane.f32.xlu1 %v368_v6  ;;  %s349_s16 = scalar_lea.vmem %s1028_s3, %s1053_s21  ;;  %s352_s14 = scalar_lea.vmem %s1029_s4, %s1053_s21 }
  0x2f   : > { %s355_s18 = scalar_lea.vmem %s1030_s5, %s1053_s21 }
  0x30   : > { %v371_v7 = vmax.f32 %v370_v5, %v366_v4 }
  0x32   : > { %v372_v8 = vsub.f32 %v363_v0, %v371_v7  ;;  %v379_v9 = vsub.f32 %v364_v1, %v371_v7  ;;  %v386_v10 = vsub.f32 %v365_v2, %v371_v7  ;;  %v393_v11 = vsub.f32 %v366_v4, %v371_v7 }
  0x34   : > { %v373_v12 = vmul.f32 1.442695, %v372_v8  ;;  %v380_v13 = vmul.f32 1.442695, %v379_v9  ;;  %v387_v14 = vmul.f32 1.442695, %v386_v10 }
  0x35   : > { %v394_v15 = vmul.f32 1.442695, %v393_v11  ;;  %v377_v20 = vsel %vm376_vm0, %v372_v8, 0.0  ;;  %v384_v22 = vsel %vm383_vm1, %v379_v9, 0.0  ;;  %v391_v26 = vsel %vm390_vm2, %v386_v10, 0.0 }
  0x36   : > { %708 = vpow2.f32 %v373_v12  ;;  %v385_v25 = vadd.f32 %v384_v22, %v377_v20  ;;  %v398_v29 = vsel %vm397_vm3, %v393_v11, 0.0 }
  0x37   : > { %710 = vpow2.f32 %v380_v13 }
  0x38   : > { %712 = vpow2.f32 %v387_v14  ;;  %v392_v28 = vadd.f32 %v391_v26, %v385_v25 }
  0x39   : > { %714 = vpow2.f32 %v394_v15 }
  0x3a   : > { %v399_v30 = vadd.f32 %v398_v29, %v392_v28 }
  0x3c   : > { %v709_v17 = vpop.eup %708 }
  0x3d   : > { %v711_v18 = vpop.eup %710 }
  0x3e   : > { %v713_v19 = vpop.eup %712  ;;  %v382_v21 = vadd.f32 %v711_v18, %v709_v17 }
  0x3f   : > { %v715_v23 = vpop.eup %714 }
  0x40   : > { %v389_v24 = vadd.f32 %v713_v19, %v382_v21 }
  0x42   : > { %v396_v27 = vadd.f32 %v715_v23, %v389_v24 }
  0x44   : > { %716 = vlog2.f32 %v396_v27 }
  0x4a   : > { %v717_v31 = vpop.eup %716 }
  0x4b   : > { %v401_v32 = vmul.f32 0.6931472, %v717_v31 }
  0x4d   : > { %v402_v33 = vsub.f32 %v401_v32, %v399_v30 }
  0x4f   : > { %417 = vadd.xlane.f32.xlu0 %v402_v33  ;;  %v407_v34 = vmul.f32 %v402_v33, %v368_v6 }
  0x57   : > { %430 = vadd.xlane.f32.xlu0 %v407_v34 }
  0xa1   : > { %v443_v35 = vpop.xlane.xlu1 %442 }
  0xa2   : > { %v444_v37 = vrot.slane %v443_v35, 4 }
  0xa4   : > { %v445_v40 = vadd.f32 %v444_v37, %v443_v35 }
  0xa6   : > { %v446_v43 = vrot.slane %v445_v40, 2 }
  0xa8   : > { %v447_v49 = vadd.f32 %v446_v43, %v445_v40 }
  0xaa   : > { %v448_v52 = vrot.slane %v447_v49, 1 }
  0xac   : > { %v449_v55 = vadd.f32 %v448_v52, %v447_v49 }
  0xc2   : > { %v418_v36 = vpop.xlane.xlu0 %417 }
  0xc3   : > { %v419_v38 = vrot.slane %v418_v36, 4 }
  0xc5   : > { %v420_v39 = vadd.f32 %v419_v38, %v418_v36 }
  0xc7   : > { %v421_v41 = vrot.slane %v420_v39, 2 }
  0xc9   : > { %v422_v42 = vadd.f32 %v421_v41, %v420_v39 }
  0xca   : > { %v431_v44 = vpop.xlane.xlu0 %430 }
  0xcb   : > { %v432_v45 = vrot.slane %v431_v44, 4  ;;  %v423_v46 = vrot.slane %v422_v42, 1 }
  0xcd   : > { %v433_v47 = vadd.f32 %v432_v45, %v431_v44  ;;  %v424_v48 = vadd.f32 %v423_v46, %v422_v42 }
  0xcf   : > { %v434_v50 = vrot.slane %v433_v47, 2  ;;  %635 = vpush %v424_v48 }
  0xd1   : > { %v435_v51 = vadd.f32 %v434_v50, %v433_v47 }
  0xd3   : > { %v436_v53 = vrot.slane %v435_v51, 1 }
  0xd5   : > { %v437_v54 = vadd.f32 %v436_v53, %v435_v51 }
  0xd7   : > { %637 = vpush %v437_v54 }
  0xd8   : > { %639 = vpush %v449_v55 }
 0x100   : > { %s636_s27 = spop %635 }
 0x101   : > { %v426_v56 = vstv %s636_s27 }
 0x102   : > { %428 = vst.msk [vmem:[%s349_s16] sm:$0x1] %vm427_vm4, %v426_v56 }
 0x108   : > { %s638_s15 = spop %637 }
 0x109   : > { %v439_v57 = vstv %s638_s15  ;;  %s640_s10 = spop %639 }
 0x10a   : > { %440 = vst.msk [vmem:[%s352_s14] sm:$0x1] %vm427_vm4, %v439_v57  ;;  %v451_v58 = vstv %s640_s10 }
 0x10b   : > { %452 = vst.msk [vmem:[%s355_s18] sm:$0x1] %vm427_vm4, %v451_v58 }
 0x10c PF: > { %s22_s23 = sadd.s32 1, %s862_s23   ;;  %s1044_s11 = sld [smem:[#allocation12_spill]] }
 0x10d   : > { %p19_p0 = scmp.ge.s32.totalorder %s22_s23, 4   ;;  %s1045_s18 = smov %s846_s19 }
 0x10e   : > { %s1046_s19 = smov %s850_s20  ;;  %s1047_s20 = smov %s943_s29 }
 0x10f   : > { %s1048_s21 = smov %s858_s22  ;;  %21 = sbr.rel (!%p19_p0) target bundleno = 9 (0x9), region = 128 }
 0x112   : > { %s1049_s22 = smov %s1044_s11 }
 0x114   :  { %494 = vsyncpa [#allocation6], 1 }
 0x115   :  { %496 = vsyncpa [#allocation6 + $0x1], 1 }
 0x116   :  { %497 = vsyncpa [#allocation8], 1 }
 0x117   :  { %499 = vsyncpa [#allocation8 + $0x1], 1 }

</bundles_post_ra>
